<compile_context>
chip_gen: v6e
topology: v6e:2x2x1
jax: 0.10.0
libtpu: 0.0.40
codegen_flags: <defaults>
</compile_context>

<pallas_src>
import numpy as np
import jax
import jax.numpy as jnp
from jax.experimental import pallas as pl
from jax.experimental.pallas import tpu as pltpu

ACT_DTYPE = jnp.bfloat16        # HBM storage dtype for inter-stage activations
LANE = 128


# ----------------------------------------------------------------------------
# small helpers
# ----------------------------------------------------------------------------
def _pad_amounts(padding, is_causal):
    if is_causal:
        return padding, 0
    left = padding // 2
    return left, padding - left


def _round_up(v, m):
    return ((v + m - 1) // m) * m


def _elu(v):
    # ELU(alpha=1).  exp on the discarded branch may hit +inf but the select
    # keeps the result finite (do not switch to a formulation that multiplies
    # the branches).
    return jnp.where(v > 0.0, v, jnp.exp(v) - 1.0)


# ----------------------------------------------------------------------------
# fused stage kernel
# ----------------------------------------------------------------------------
def _make_stage_kernel(*, entry_kind, entry_K, n_units, unit_K, unit_dils,
                       unit_pads, has_exit, exit_K, exit_pads, L, pl_a):
    """Build a fused stage kernel.

    Ref order: x, we, be, [w1s, b1s, w2s, b2s], [wo, bo, gamma, beta], o, [buf]
    All activations inside the stage stay in f32 in VMEM / vregs.
    """
    need_buf = (n_units > 0) or has_exit
    f32 = jnp.float32

    def kernel(*refs):
        it = iter(refs)
        x_ref = next(it)
        we_ref = next(it)
        be_ref = next(it)
        if n_units > 0:
            w1_ref = next(it); b1_ref = next(it)
            w2_ref = next(it); b2_ref = next(it)
        if has_exit:
            wo_ref = next(it); bo_ref = next(it)
            g_ref = next(it); bt_ref = next(it)
        o_ref = next(it)
        buf = next(it) if need_buf else None

        # -------- entry conv (+ ELU) --------
        if entry_kind == "conv_in":
            # x_ref: (C_in, L + K - 1), pre-padded; stride 1, dilation 1.
            c_in = x_ref.shape[0]
            acc = None
            for k in range(entry_K):
                xk = x_ref[:, pl.ds(k, L)].astype(f32)      # (C_in, L)
                wk = we_ref[k].astype(f32)                   # (C, C_in)
                if c_in == 1:
                    term = wk * xk                           # (C,1)*(1,L) VPU FMA
                else:
                    term = jnp.dot(wk, xk, preferred_element_type=f32)
                acc = term if acc is None else acc + term
        else:
            # "down": taps already folded onto channels -> one matmul.
            acc = jnp.dot(we_ref[...].astype(f32), x_ref[...].astype(f32),
                          preferred_element_type=f32)
        cur = _elu(acc + be_ref[...].astype(f32))            # (C, L)

        if need_buf:
            buf[...] = jnp.zeros_like(buf)                   # zero halos once

        # -------- residual units: dilated conv -> ELU -> 1x1 conv -> +res ----
        for u in range(n_units):
            d = unit_dils[u]
            p_left = unit_pads[u][0]
            buf[:, pl.ds(pl_a, L)] = cur
            acc = None
            for k in range(unit_K):
                off = pl_a - p_left + k * d                  # static offset
                term = jnp.dot(w1_ref[u * unit_K + k].astype(f32),
                               buf[:, pl.ds(off, L)],
                               preferred_element_type=f32)
                acc = term if acc is None else acc + term
            h = _elu(acc + b1_ref[u].astype(f32))
            cur = (jnp.dot(w2_ref[u].astype(f32), h, preferred_element_type=f32)
                   + b2_ref[u].astype(f32) + cur)

        # -------- exit: conv_out + fused FiLM --------
        if has_exit:
            p_left = exit_pads[0]
            buf[:, pl.ds(pl_a, L)] = cur
            acc = None
            for k in range(exit_K):
                off = pl_a - p_left + k
                term = jnp.dot(wo_ref[k].astype(f32), buf[:, pl.ds(off, L)],
                               preferred_element_type=f32)
                acc = term if acc is None else acc + term
            cur = (g_ref[...].astype(f32) * (acc + bo_ref[...].astype(f32))
                   + bt_ref[...].astype(f32))

        o_ref[...] = cur.astype(o_ref.dtype)

    return kernel


def fused_stage_pallas(x, *, entry, units, exit_spec, is_causal, out_dtype):
    """Run one fused encoder stage on x of shape (B, Cx, Lx), channels-first."""
    B, Cx, Lx = x.shape

    entry_kind = entry["kind"]
    if entry_kind == "conv_in":
        w = entry["w"]                                   # (K, C_in, C)
        K_e, _, C = w.shape
        L = Lx - (K_e - 1)                               # Lx is pre-padded
        we = jnp.transpose(w, (0, 2, 1))                 # (K, C, C_in)
    else:                                                # "down"
        w = entry["w"]                                   # (K, C_prev, C)
        K_e, C_prev, C = w.shape
        assert Cx == K_e * C_prev
        L = Lx
        we = jnp.transpose(w, (2, 0, 1)).reshape(C, K_e * C_prev)
    be = entry["b"].reshape(C, 1)

    n_units = len(units)
    if n_units:
        unit_K = units[0]["conv_in"][0].shape[0]
        unit_dils = tuple(int(u["dilation"]) for u in units)
        unit_pads = tuple(_pad_amounts((unit_K - 1) * d, is_causal)
                          for d in unit_dils)
        # stacked (nu*K, C, C) so the kernel indexes a single leading axis
        w1s = jnp.concatenate(
            [jnp.transpose(u["conv_in"][0], (0, 2, 1)) for u in units], axis=0)
        b1s = jnp.stack([u["conv_in"][1].reshape(C, 1) for u in units])
        w2s = jnp.stack([u["conv_out"][0][0].T for u in units])
        b2s = jnp.stack([u["conv_out"][1].reshape(C, 1) for u in units])
    else:
        unit_K, unit_dils, unit_pads = 1, (), ()

    has_exit = exit_spec is not None
    if has_exit:
        wo = exit_spec["w"]                              # (K_out, C, C_f)
        K_o, _, C_f = wo.shape
        exit_pads = _pad_amounts(K_o - 1, is_causal)
        wo_t = jnp.transpose(wo, (0, 2, 1))              # (K_out, C_f, C)
        bo = exit_spec["b"].reshape(C_f, 1)
        gamma = exit_spec["gamma"].reshape(C_f, 1)
        beta = exit_spec["beta"].reshape(C_f, 1)
        C_out = C_f
    else:
        K_o, exit_pads, C_out = 1, (0, 0), C

    # halo sizes for the in-kernel zero-padded activation buffer
    pads = list(unit_pads) + ([exit_pads] if has_exit else [])
    PL = max([p[0] for p in pads], default=0)
    PR = max([p[1] for p in pads], default=0)
    pl_a = _round_up(PL, LANE) if PL else 0              # lane-aligned act start
    need_buf = (n_units > 0) or has_exit

    kernel = _make_stage_kernel(
        entry_kind=entry_kind, entry_K=K_e, n_units=n_units, unit_K=unit_K,
        unit_dils=unit_dils, unit_pads=unit_pads, has_exit=has_exit,
        exit_K=K_o, exit_pads=exit_pads, L=L, pl_a=pl_a)

    def full_spec(a):
        nd = a.ndim
        return pl.BlockSpec(a.shape, lambda b, _nd=nd: (0,) * _nd)

    inputs = [x, we, be]
    in_specs = [pl.BlockSpec((None, Cx, Lx), lambda b: (b, 0, 0)),
                full_spec(we), full_spec(be)]
    if n_units:
        for a in (w1s, b1s, w2s, b2s):
            inputs.append(a); in_specs.append(full_spec(a))
    if has_exit:
        for a in (wo_t, bo, gamma, beta):
            inputs.append(a); in_specs.append(full_spec(a))

    scratch = []
    if need_buf:
        scratch.append(pltpu.VMEM((C, pl_a + L + PR), jnp.float32))

    out = pl.pallas_call(
        kernel,
        out_shape=jax.ShapeDtypeStruct((B, C_out, L), out_dtype),
        grid=(B,),
        in_specs=in_specs,
        out_specs=pl.BlockSpec((None, C_out, L), lambda b: (b, 0, 0)),
        scratch_shapes=scratch,
        compiler_params=pltpu.CompilerParams(
            dimension_semantics=("parallel",)),   # tiny tiles -> default VMEM limit is fine
    )(*inputs)
    return out


# ----------------------------------------------------------------------------
# wrapper-side layout glue (plain JAX, negligible traffic)
# ----------------------------------------------------------------------------
def _phase_decompose(x, stride, is_causal):
    """(B, C, L) -> (B, 2*stride*C, L_out): taps of the stride-`stride`,
    kernel 2*stride downsampling conv folded onto the channel axis."""
    K = 2 * stride
    padl, padr = _pad_amounts(K - stride, is_causal)     # padding = kernel - stride
    x_pad = jnp.pad(x, ((0, 0), (0, 0), (padl, padr)))
    L_pad = x_pad.shape[-1]
    L_out = (L_pad - K) // stride + 1
    taps = [jax.lax.slice_in_dim(x_pad, k, k + (L_out - 1) * stride + 1,
                                 stride, axis=2) for k in range(K)]
    return jnp.concatenate(taps, axis=1)


# ----------------------------------------------------------------------------
# Encoder: parameters + forward
# ----------------------------------------------------------------------------
def init_encoder_params(key, *, in_channels, out_channels, hidden_channels,
                        depth_rate, kernel_size_in, kernel_size_out,
                        kernel_size, stride, dilation_rate, num_layers):
    def conv_init(k_, ksz, cin, cout):
        kw, kb = jax.random.split(k_)
        bound = 1.0 / np.sqrt(cin * ksz)
        w = bound * jax.random.normal(kw, (ksz, cin, cout), jnp.float32)
        b = bound * jax.random.normal(kb, (cout,), jnp.float32)
        return w, b

    keys = jax.random.split(key, 4 + len(stride))
    params = {
        "kernel_size_in": kernel_size_in,
        "kernel_size_out": kernel_size_out,
        "kernel_size": kernel_size,
    }
    params["conv_in"] = conv_init(keys[0], kernel_size_in, in_channels, hidden_channels)

    blocks = []
    cin = hidden_channels
    for i, s in enumerate(stride):
        cout = depth_rate * cin
        bkeys = jax.random.split(keys[1 + i], num_layers + 1)
        units = []
        for layer in range(num_layers):
            ukeys = jax.random.split(bkeys[layer], 2)
            units.append({
                "dilation": dilation_rate ** layer,
                "conv_in": conv_init(ukeys[0], kernel_size, cin, cin),
                "conv_out": conv_init(ukeys[1], 1, cin, cin),
            })
        blocks.append({"stride": s, "units": units,
                       "down": conv_init(bkeys[-1], 2 * s, cin, cout)})
        cin = cout
    params["blocks"] = blocks
    params["conv_out"] = conv_init(keys[1 + len(stride)], kernel_size_out, cin, out_channels)
    # FiLM1d embeddings (num_modes = 2)
    params["film_gamma"] = jax.random.normal(keys[2 + len(stride)], (2, out_channels), jnp.float32)
    params["film_beta"] = jax.random.normal(keys[3 + len(stride)], (2, out_channels), jnp.float32)
    return params


def encoder_forward(params, x_ncl, *, denoise=False, is_causal=True):
    """Mirrors Encoder.forward.  x_ncl: (B, in_channels, L) -> (B, out_channels, L')."""
    blocks = params["blocks"]
    nb = len(blocks)

    # stage 0: conv_in + ELU + block-0 residual units
    k_in = params["kernel_size_in"]
    padl, padr = _pad_amounts(k_in - 1, is_causal)
    x0 = jnp.pad(x_ncl, ((0, 0), (0, 0), (padl, padr)))
    w_in, b_in = params["conv_in"]
    act = fused_stage_pallas(
        x0,
        entry={"kind": "conv_in", "w": w_in, "b": b_in},
        units=blocks[0]["units"],
        exit_spec=None,
        is_causal=is_causal,
        out_dtype=ACT_DTYPE)

    # stages 1..nb-1: block-(i-1) downsample + ELU + block-i residual units
    for i in range(1, nb):
        prev = blocks[i - 1]
        xc = _phase_decompose(act, prev["stride"], is_causal)
        wd, bd = prev["down"]
        act = fused_stage_pallas(
            xc,
            entry={"kind": "down", "w": wd, "b": bd},
            units=blocks[i]["units"],
            exit_spec=None,
            is_causal=is_causal,
            out_dtype=ACT_DTYPE)

    # final stage: last downsample + ELU + conv_out + fused FiLM
    last = blocks[-1]
    xc = _phase_decompose(act, last["stride"], is_causal)
    wd, bd = last["down"]
    wo, bo = params["conv_out"]
    mode_idx = 1 if denoise else 0   # mode is constant across the batch
    out = fused_stage_pallas(
        xc,
        entry={"kind": "down", "w": wd, "b": bd},
        units=[],
        exit_spec={"w": wo, "b": bo,
                   "gamma": params["film_gamma"][mode_idx],
                   "beta": params["film_beta"][mode_idx]},
        is_causal=is_causal,
        out_dtype=jnp.float32)
    return out


# ----------------------------------------------------------------------------
# Pure-JAX reference (mirrors the bf16 stage-boundary casts of the Pallas path)
# ----------------------------------------------------------------------------
def _ref_conv(x, w, b, *, stride=1, dilation=1, pad_left=0, pad_right=0):
    rhs = jnp.transpose(w, (2, 1, 0))                    # (C_out, C_in, K)
    y = jax.lax.conv_general_dilated(
        x, rhs, window_strides=(stride,), padding=[(pad_left, pad_right)],
        rhs_dilation=(dilation,), dimension_numbers=("NCH", "OIH", "NCH"),
        precision=jax.lax.Precision.HIGHEST)
    return y + b[None, :, None]


def ref_encoder_forward(params, x, *, denoise=False, is_causal=True):
    B = x.shape[0]
    k_in = params["kernel_size_in"]
    padl, padr = _pad_amounts(k_in - 1, is_causal)
    w, b = params["conv_in"]
    x = jax.nn.elu(_ref_conv(x, w, b, pad_left=padl, pad_right=padr))
    ks = params["kernel_size"]
    for block in params["blocks"]:
        for unit in block["units"]:
            d = unit["dilation"]
            ul, ur = _pad_amounts((ks - 1) * d, is_causal)
            w1, b1 = unit["conv_in"]
            h = jax.nn.elu(_ref_conv(x, w1, b1, dilation=d, pad_left=ul, pad_right=ur))
            w2, b2 = unit["conv_out"]
            x = _ref_conv(h, w2, b2) + x
        # Pallas stage boundary: inter-stage activations stored as bf16 in HBM
        x = x.astype(ACT_DTYPE).astype(jnp.float32)
        s = block["stride"]
        dl, dr = _pad_amounts(s, is_causal)
        wd, bd = block["down"]
        x = jax.nn.elu(_ref_conv(x, wd, bd, stride=s, pad_left=dl, pad_right=dr))
    k_out = params["kernel_size_out"]
    ol, orr = _pad_amounts(k_out - 1, is_causal)
    wo, bo = params["conv_out"]
    x = _ref_conv(x, wo, bo, pad_left=ol, pad_right=orr)
    mode = jnp.full((B,), 1 if denoise else 0, dtype=jnp.int32)
    gamma = params["film_gamma"][mode]
    beta = params["film_beta"][mode]
    return gamma[:, :, None] * x + beta[:, :, None]


# ----------------------------------------------------------------------------
if __name__ == "__main__":
    key = jax.random.PRNGKey(0)
    kp, kx = jax.random.split(key)

    cfg = dict(in_channels=1, out_channels=8, hidden_channels=4, depth_rate=2,
               kernel_size_in=7, kernel_size_out=3, kernel_size=3,
               stride=[2, 4], dilation_rate=3, num_layers=3)
    params = init_encoder_params(kp, **cfg)

    batch, length = 2, 64
    x = jax.random.normal(kx, (batch, cfg["in_channels"], length), jnp.float32)

    out = None
    for is_causal in (True, False):
        for denoise in (False, True):
            out = encoder_forward(params, x, denoise=denoise, is_causal=is_causal)
            out = jax.block_until_ready(out)
            ref = ref_encoder_forward(params, x, denoise=denoise, is_causal=is_causal)
            np.testing.assert_allclose(np.asarray(out), np.asarray(ref),
                                       rtol=2e-2, atol=2e-2)

    assert out.shape == (batch, cfg["out_channels"], length // (2 * 4)), out.shape
    print("KERNEL_OK")
</pallas_src>

<mosaic_0001>
module attributes {stable_mosaic.version = 11 : i64} {
  func.func @kernel(%arg0: i32, %arg1: memref<1x1x70xf32, #tpu.memory_space<vmem>>, %arg2: memref<7x4x1xf32, #tpu.memory_space<vmem>>, %arg3: memref<4x1xf32, #tpu.memory_space<vmem>>, %arg4: memref<9x4x4xf32, #tpu.memory_space<vmem>>, %arg5: memref<3x4x1xf32, #tpu.memory_space<vmem>>, %arg6: memref<3x4x4xf32, #tpu.memory_space<vmem>>, %arg7: memref<3x4x1xf32, #tpu.memory_space<vmem>>, %arg8: memref<1x4x64xbf16, #tpu.memory_space<vmem>>, %arg9: memref<4x192xf32, #tpu.memory_space<vmem>>) attributes {dimension_semantics = [#tpu.dimension_semantics<parallel>], iteration_bounds = array<i64: 2>, scalar_prefetch = 0 : i64, scratch_operands = 1 : i64, tpu.core_type = #tpu.core_type<tc>, window_params = [{transform_indices = @transform_0, window_bounds = array<i64: 1, 1, 70>}, {pipeline_mode = #tpu.pipeline_mode<synchronous>, transform_indices = @transform_1, window_bounds = array<i64: 7, 4, 1>}, {pipeline_mode = #tpu.pipeline_mode<synchronous>, transform_indices = @transform_2, window_bounds = array<i64: 4, 1>}, {pipeline_mode = #tpu.pipeline_mode<synchronous>, transform_indices = @transform_3, window_bounds = array<i64: 9, 4, 4>}, {pipeline_mode = #tpu.pipeline_mode<synchronous>, transform_indices = @transform_4, window_bounds = array<i64: 3, 4, 1>}, {pipeline_mode = #tpu.pipeline_mode<synchronous>, transform_indices = @transform_5, window_bounds = array<i64: 3, 4, 4>}, {pipeline_mode = #tpu.pipeline_mode<synchronous>, transform_indices = @transform_6, window_bounds = array<i64: 3, 4, 1>}, {transform_indices = @transform_7, window_bounds = array<i64: 1, 4, 64>}]} {
    %c0 = arith.constant 0 : index
    %c0_0 = arith.constant 0 : index
    %c0_1 = arith.constant 0 : index
    %0 = vector.load %arg1[%c0, %c0_0, %c0_1] : memref<1x1x70xf32, #tpu.memory_space<vmem>>, vector<1x1x64xf32>
    %1 = vector.shape_cast %0 : vector<1x1x64xf32> to vector<1x64xf32>
    %c0_2 = arith.constant 0 : index
    %c0_3 = arith.constant 0 : index
    %c0_4 = arith.constant 0 : index
    %2 = vector.load %arg2[%c0_2, %c0_3, %c0_4] : memref<7x4x1xf32, #tpu.memory_space<vmem>>, vector<1x4x1xf32>
    %3 = vector.shape_cast %2 : vector<1x4x1xf32> to vector<4x1xf32>
    %4 = vector.broadcast %3 : vector<4x1xf32> to vector<4x64xf32>
    %5 = vector.broadcast %1 : vector<1x64xf32> to vector<4x64xf32>
    %6 = arith.mulf %4, %5 : vector<4x64xf32>
    %c0_5 = arith.constant 0 : index
    %c0_6 = arith.constant 0 : index
    %c1 = arith.constant 1 : index
    %7 = vector.load %arg1[%c0_5, %c0_6, %c1] : memref<1x1x70xf32, #tpu.memory_space<vmem>>, vector<1x1x64xf32>
    %8 = vector.shape_cast %7 : vector<1x1x64xf32> to vector<1x64xf32>
    %c1_7 = arith.constant 1 : index
    %c0_8 = arith.constant 0 : index
    %c0_9 = arith.constant 0 : index
    %9 = vector.load %arg2[%c1_7, %c0_8, %c0_9] : memref<7x4x1xf32, #tpu.memory_space<vmem>>, vector<1x4x1xf32>
    %10 = vector.shape_cast %9 : vector<1x4x1xf32> to vector<4x1xf32>
    %11 = vector.broadcast %10 : vector<4x1xf32> to vector<4x64xf32>
    %12 = vector.broadcast %8 : vector<1x64xf32> to vector<4x64xf32>
    %13 = arith.mulf %11, %12 : vector<4x64xf32>
    %14 = arith.addf %6, %13 : vector<4x64xf32>
    %c0_10 = arith.constant 0 : index
    %c0_11 = arith.constant 0 : index
    %c2 = arith.constant 2 : index
    %15 = vector.load %arg1[%c0_10, %c0_11, %c2] : memref<1x1x70xf32, #tpu.memory_space<vmem>>, vector<1x1x64xf32>
    %16 = vector.shape_cast %15 : vector<1x1x64xf32> to vector<1x64xf32>
    %c2_12 = arith.constant 2 : index
    %c0_13 = arith.constant 0 : index
    %c0_14 = arith.constant 0 : index
    %17 = vector.load %arg2[%c2_12, %c0_13, %c0_14] : memref<7x4x1xf32, #tpu.memory_space<vmem>>, vector<1x4x1xf32>
    %18 = vector.shape_cast %17 : vector<1x4x1xf32> to vector<4x1xf32>
    %19 = vector.broadcast %18 : vector<4x1xf32> to vector<4x64xf32>
    %20 = vector.broadcast %16 : vector<1x64xf32> to vector<4x64xf32>
    %21 = arith.mulf %19, %20 : vector<4x64xf32>
    %22 = arith.addf %14, %21 : vector<4x64xf32>
    %c0_15 = arith.constant 0 : index
    %c0_16 = arith.constant 0 : index
    %c3 = arith.constant 3 : index
    %23 = vector.load %arg1[%c0_15, %c0_16, %c3] : memref<1x1x70xf32, #tpu.memory_space<vmem>>, vector<1x1x64xf32>
    %24 = vector.shape_cast %23 : vector<1x1x64xf32> to vector<1x64xf32>
    %c3_17 = arith.constant 3 : index
    %c0_18 = arith.constant 0 : index
    %c0_19 = arith.constant 0 : index
    %25 = vector.load %arg2[%c3_17, %c0_18, %c0_19] : memref<7x4x1xf32, #tpu.memory_space<vmem>>, vector<1x4x1xf32>
    %26 = vector.shape_cast %25 : vector<1x4x1xf32> to vector<4x1xf32>
    %27 = vector.broadcast %26 : vector<4x1xf32> to vector<4x64xf32>
    %28 = vector.broadcast %24 : vector<1x64xf32> to vector<4x64xf32>
    %29 = arith.mulf %27, %28 : vector<4x64xf32>
    %30 = arith.addf %22, %29 : vector<4x64xf32>
    %c0_20 = arith.constant 0 : index
    %c0_21 = arith.constant 0 : index
    %c4 = arith.constant 4 : index
    %31 = vector.load %arg1[%c0_20, %c0_21, %c4] : memref<1x1x70xf32, #tpu.memory_space<vmem>>, vector<1x1x64xf32>
    %32 = vector.shape_cast %31 : vector<1x1x64xf32> to vector<1x64xf32>
    %c4_22 = arith.constant 4 : index
    %c0_23 = arith.constant 0 : index
    %c0_24 = arith.constant 0 : index
    %33 = vector.load %arg2[%c4_22, %c0_23, %c0_24] : memref<7x4x1xf32, #tpu.memory_space<vmem>>, vector<1x4x1xf32>
    %34 = vector.shape_cast %33 : vector<1x4x1xf32> to vector<4x1xf32>
    %35 = vector.broadcast %34 : vector<4x1xf32> to vector<4x64xf32>
    %36 = vector.broadcast %32 : vector<1x64xf32> to vector<4x64xf32>
    %37 = arith.mulf %35, %36 : vector<4x64xf32>
    %38 = arith.addf %30, %37 : vector<4x64xf32>
    %c0_25 = arith.constant 0 : index
    %c0_26 = arith.constant 0 : index
    %c5 = arith.constant 5 : index
    %39 = vector.load %arg1[%c0_25, %c0_26, %c5] : memref<1x1x70xf32, #tpu.memory_space<vmem>>, vector<1x1x64xf32>
    %40 = vector.shape_cast %39 : vector<1x1x64xf32> to vector<1x64xf32>
    %c5_27 = arith.constant 5 : index
    %c0_28 = arith.constant 0 : index
    %c0_29 = arith.constant 0 : index
    %41 = vector.load %arg2[%c5_27, %c0_28, %c0_29] : memref<7x4x1xf32, #tpu.memory_space<vmem>>, vector<1x4x1xf32>
    %42 = vector.shape_cast %41 : vector<1x4x1xf32> to vector<4x1xf32>
    %43 = vector.broadcast %42 : vector<4x1xf32> to vector<4x64xf32>
    %44 = vector.broadcast %40 : vector<1x64xf32> to vector<4x64xf32>
    %45 = arith.mulf %43, %44 : vector<4x64xf32>
    %46 = arith.addf %38, %45 : vector<4x64xf32>
    %c0_30 = arith.constant 0 : index
    %c0_31 = arith.constant 0 : index
    %c6 = arith.constant 6 : index
    %47 = vector.load %arg1[%c0_30, %c0_31, %c6] : memref<1x1x70xf32, #tpu.memory_space<vmem>>, vector<1x1x64xf32>
    %48 = vector.shape_cast %47 : vector<1x1x64xf32> to vector<1x64xf32>
    %c6_32 = arith.constant 6 : index
    %c0_33 = arith.constant 0 : index
    %c0_34 = arith.constant 0 : index
    %49 = vector.load %arg2[%c6_32, %c0_33, %c0_34] : memref<7x4x1xf32, #tpu.memory_space<vmem>>, vector<1x4x1xf32>
    %50 = vector.shape_cast %49 : vector<1x4x1xf32> to vector<4x1xf32>
    %51 = vector.broadcast %50 : vector<4x1xf32> to vector<4x64xf32>
    %52 = vector.broadcast %48 : vector<1x64xf32> to vector<4x64xf32>
    %53 = arith.mulf %51, %52 : vector<4x64xf32>
    %54 = arith.addf %46, %53 : vector<4x64xf32>
    %c0_35 = arith.constant 0 : index
    %c0_36 = arith.constant 0 : index
    %55 = vector.load %arg3[%c0_35, %c0_36] : memref<4x1xf32, #tpu.memory_space<vmem>>, vector<4x1xf32>
    %56 = vector.broadcast %55 : vector<4x1xf32> to vector<4x64xf32>
    %57 = arith.addf %54, %56 : vector<4x64xf32>
    %cst = arith.constant 0.000000e+00 : f32
    %58 = vector.broadcast %cst : f32 to vector<4x64xf32>
    %59 = arith.cmpf ogt, %57, %58 : vector<4x64xf32>
    %60 = math.exp %57 : vector<4x64xf32>
    %cst_37 = arith.constant 1.000000e+00 : f32
    %61 = vector.broadcast %cst_37 : f32 to vector<4x64xf32>
    %62 = arith.subf %60, %61 : vector<4x64xf32>
    %63 = arith.select %59, %57, %62 : vector<4x64xi1>, vector<4x64xf32>
    %cst_38 = arith.constant 0.000000e+00 : f32
    %64 = vector.broadcast %cst_38 : f32 to vector<4x192xf32>
    %c0_39 = arith.constant 0 : index
    %c0_40 = arith.constant 0 : index
    %65 = vector.load %arg9[%c0_39, %c0_40] : memref<4x192xf32, #tpu.memory_space<vmem>>, vector<4x192xf32>
    tpu.vector_store %arg9[%c0_39, %c0_40], %64 {strides = array<i32>} : memref<4x192xf32, #tpu.memory_space<vmem>>, vector<4x192xf32>,
    %c0_41 = arith.constant 0 : index
    %c128 = arith.constant 128 : index
    %66 = vector.load %arg9[%c0_41, %c128] : memref<4x192xf32, #tpu.memory_space<vmem>>, vector<4x64xf32>
    tpu.vector_store %arg9[%c0_41, %c128], %63 {strides = array<i32>} : memref<4x192xf32, #tpu.memory_space<vmem>>, vector<4x64xf32>,
    %c0_42 = arith.constant 0 : index
    %c0_43 = arith.constant 0 : index
    %c0_44 = arith.constant 0 : index
    %67 = vector.load %arg4[%c0_42, %c0_43, %c0_44] : memref<9x4x4xf32, #tpu.memory_space<vmem>>, vector<1x4x4xf32>
    %68 = vector.shape_cast %67 : vector<1x4x4xf32> to vector<4x4xf32>
    %c0_45 = arith.constant 0 : index
    %c126 = arith.constant 126 : index
    %69 = vector.load %arg9[%c0_45, %c126] : memref<4x192xf32, #tpu.memory_space<vmem>>, vector<4x64xf32>
    %cst_46 = arith.constant dense<0.000000e+00> : vector<4x64xf32>
    %70 = tpu.matmul %68, %69, %cst_46 {dimension_numbers = #tpu.dot_dimension_numbers<[1], [0], [0], [1], [0, 0, 1, 1], [], []>} : vector<4x4xf32>, vector<4x64xf32>, vector<4x64xf32> -> vector<4x64xf32>
    %c1_47 = arith.constant 1 : index
    %c0_48 = arith.constant 0 : index
    %c0_49 = arith.constant 0 : index
    %71 = vector.load %arg4[%c1_47, %c0_48, %c0_49] : memref<9x4x4xf32, #tpu.memory_space<vmem>>, vector<1x4x4xf32>
    %72 = vector.shape_cast %71 : vector<1x4x4xf32> to vector<4x4xf32>
    %c0_50 = arith.constant 0 : index
    %c127 = arith.constant 127 : index
    %73 = vector.load %arg9[%c0_50, %c127] : memref<4x192xf32, #tpu.memory_space<vmem>>, vector<4x64xf32>
    %cst_51 = arith.constant dense<0.000000e+00> : vector<4x64xf32>
    %74 = tpu.matmul %72, %73, %cst_51 {dimension_numbers = #tpu.dot_dimension_numbers<[1], [0], [0], [1], [0, 0, 1, 1], [], []>} : vector<4x4xf32>, vector<4x64xf32>, vector<4x64xf32> -> vector<4x64xf32>
    %75 = arith.addf %70, %74 : vector<4x64xf32>
    %c2_52 = arith.constant 2 : index
    %c0_53 = arith.constant 0 : index
    %c0_54 = arith.constant 0 : index
    %76 = vector.load %arg4[%c2_52, %c0_53, %c0_54] : memref<9x4x4xf32, #tpu.memory_space<vmem>>, vector<1x4x4xf32>
    %77 = vector.shape_cast %76 : vector<1x4x4xf32> to vector<4x4xf32>
    %c0_55 = arith.constant 0 : index
    %c128_56 = arith.constant 128 : index
    %78 = vector.load %arg9[%c0_55, %c128_56] : memref<4x192xf32, #tpu.memory_space<vmem>>, vector<4x64xf32>
    %cst_57 = arith.constant dense<0.000000e+00> : vector<4x64xf32>
    %79 = tpu.matmul %77, %78, %cst_57 {dimension_numbers = #tpu.dot_dimension_numbers<[1], [0], [0], [1], [0, 0, 1, 1], [], []>} : vector<4x4xf32>, vector<4x64xf32>, vector<4x64xf32> -> vector<4x64xf32>
    %80 = arith.addf %75, %79 : vector<4x64xf32>
    %c0_58 = arith.constant 0 : index
    %c0_59 = arith.constant 0 : index
    %c0_60 = arith.constant 0 : index
    %81 = vector.load %arg5[%c0_58, %c0_59, %c0_60] : memref<3x4x1xf32, #tpu.memory_space<vmem>>, vector<1x4x1xf32>
    %82 = vector.shape_cast %81 : vector<1x4x1xf32> to vector<4x1xf32>
    %83 = vector.broadcast %82 : vector<4x1xf32> to vector<4x64xf32>
    %84 = arith.addf %80, %83 : vector<4x64xf32>
    %cst_61 = arith.constant 0.000000e+00 : f32
    %85 = vector.broadcast %cst_61 : f32 to vector<4x64xf32>
    %86 = arith.cmpf ogt, %84, %85 : vector<4x64xf32>
    %87 = math.exp %84 : vector<4x64xf32>
    %cst_62 = arith.constant 1.000000e+00 : f32
    %88 = vector.broadcast %cst_62 : f32 to vector<4x64xf32>
    %89 = arith.subf %87, %88 : vector<4x64xf32>
    %90 = arith.select %86, %84, %89 : vector<4x64xi1>, vector<4x64xf32>
    %c0_63 = arith.constant 0 : index
    %c0_64 = arith.constant 0 : index
    %c0_65 = arith.constant 0 : index
    %91 = vector.load %arg6[%c0_63, %c0_64, %c0_65] : memref<3x4x4xf32, #tpu.memory_space<vmem>>, vector<1x4x4xf32>
    %92 = vector.shape_cast %91 : vector<1x4x4xf32> to vector<4x4xf32>
    %cst_66 = arith.constant dense<0.000000e+00> : vector<4x64xf32>
    %93 = tpu.matmul %92, %90, %cst_66 {dimension_numbers = #tpu.dot_dimension_numbers<[1], [0], [0], [1], [0, 0, 1, 1], [], []>} : vector<4x4xf32>, vector<4x64xf32>, vector<4x64xf32> -> vector<4x64xf32>
    %c0_67 = arith.constant 0 : index
    %c0_68 = arith.constant 0 : index
    %c0_69 = arith.constant 0 : index
    %94 = vector.load %arg7[%c0_67, %c0_68, %c0_69] : memref<3x4x1xf32, #tpu.memory_space<vmem>>, vector<1x4x1xf32>
    %95 = vector.shape_cast %94 : vector<1x4x1xf32> to vector<4x1xf32>
    %96 = vector.broadcast %95 : vector<4x1xf32> to vector<4x64xf32>
    %97 = arith.addf %93, %96 : vector<4x64xf32>
    %98 = arith.addf %97, %63 : vector<4x64xf32>
    %c0_70 = arith.constant 0 : index
    %c128_71 = arith.constant 128 : index
    %99 = vector.load %arg9[%c0_70, %c128_71] : memref<4x192xf32, #tpu.memory_space<vmem>>, vector<4x64xf32>
    tpu.vector_store %arg9[%c0_70, %c128_71], %98 {strides = array<i32>} : memref<4x192xf32, #tpu.memory_space<vmem>>, vector<4x64xf32>,
    %c3_72 = arith.constant 3 : index
    %c0_73 = arith.constant 0 : index
    %c0_74 = arith.constant 0 : index
    %100 = vector.load %arg4[%c3_72, %c0_73, %c0_74] : memref<9x4x4xf32, #tpu.memory_space<vmem>>, vector<1x4x4xf32>
    %101 = vector.shape_cast %100 : vector<1x4x4xf32> to vector<4x4xf32>
    %c0_75 = arith.constant 0 : index
    %c122 = arith.constant 122 : index
    %102 = vector.load %arg9[%c0_75, %c122] : memref<4x192xf32, #tpu.memory_space<vmem>>, vector<4x64xf32>
    %cst_76 = arith.constant dense<0.000000e+00> : vector<4x64xf32>
    %103 = tpu.matmul %101, %102, %cst_76 {dimension_numbers = #tpu.dot_dimension_numbers<[1], [0], [0], [1], [0, 0, 1, 1], [], []>} : vector<4x4xf32>, vector<4x64xf32>, vector<4x64xf32> -> vector<4x64xf32>
    %c4_77 = arith.constant 4 : index
    %c0_78 = arith.constant 0 : index
    %c0_79 = arith.constant 0 : index
    %104 = vector.load %arg4[%c4_77, %c0_78, %c0_79] : memref<9x4x4xf32, #tpu.memory_space<vmem>>, vector<1x4x4xf32>
    %105 = vector.shape_cast %104 : vector<1x4x4xf32> to vector<4x4xf32>
    %c0_80 = arith.constant 0 : index
    %c125 = arith.constant 125 : index
    %106 = vector.load %arg9[%c0_80, %c125] : memref<4x192xf32, #tpu.memory_space<vmem>>, vector<4x64xf32>
    %cst_81 = arith.constant dense<0.000000e+00> : vector<4x64xf32>
    %107 = tpu.matmul %105, %106, %cst_81 {dimension_numbers = #tpu.dot_dimension_numbers<[1], [0], [0], [1], [0, 0, 1, 1], [], []>} : vector<4x4xf32>, vector<4x64xf32>, vector<4x64xf32> -> vector<4x64xf32>
    %108 = arith.addf %103, %107 : vector<4x64xf32>
    %c5_82 = arith.constant 5 : index
    %c0_83 = arith.constant 0 : index
    %c0_84 = arith.constant 0 : index
    %109 = vector.load %arg4[%c5_82, %c0_83, %c0_84] : memref<9x4x4xf32, #tpu.memory_space<vmem>>, vector<1x4x4xf32>
    %110 = vector.shape_cast %109 : vector<1x4x4xf32> to vector<4x4xf32>
    %c0_85 = arith.constant 0 : index
    %c128_86 = arith.constant 128 : index
    %111 = vector.load %arg9[%c0_85, %c128_86] : memref<4x192xf32, #tpu.memory_space<vmem>>, vector<4x64xf32>
    %cst_87 = arith.constant dense<0.000000e+00> : vector<4x64xf32>
    %112 = tpu.matmul %110, %111, %cst_87 {dimension_numbers = #tpu.dot_dimension_numbers<[1], [0], [0], [1], [0, 0, 1, 1], [], []>} : vector<4x4xf32>, vector<4x64xf32>, vector<4x64xf32> -> vector<4x64xf32>
    %113 = arith.addf %108, %112 : vector<4x64xf32>
    %c1_88 = arith.constant 1 : index
    %c0_89 = arith.constant 0 : index
    %c0_90 = arith.constant 0 : index
    %114 = vector.load %arg5[%c1_88, %c0_89, %c0_90] : memref<3x4x1xf32, #tpu.memory_space<vmem>>, vector<1x4x1xf32>
    %115 = vector.shape_cast %114 : vector<1x4x1xf32> to vector<4x1xf32>
    %116 = vector.broadcast %115 : vector<4x1xf32> to vector<4x64xf32>
    %117 = arith.addf %113, %116 : vector<4x64xf32>
    %cst_91 = arith.constant 0.000000e+00 : f32
    %118 = vector.broadcast %cst_91 : f32 to vector<4x64xf32>
    %119 = arith.cmpf ogt, %117, %118 : vector<4x64xf32>
    %120 = math.exp %117 : vector<4x64xf32>
    %cst_92 = arith.constant 1.000000e+00 : f32
    %121 = vector.broadcast %cst_92 : f32 to vector<4x64xf32>
    %122 = arith.subf %120, %121 : vector<4x64xf32>
    %123 = arith.select %119, %117, %122 : vector<4x64xi1>, vector<4x64xf32>
    %c1_93 = arith.constant 1 : index
    %c0_94 = arith.constant 0 : index
    %c0_95 = arith.constant 0 : index
    %124 = vector.load %arg6[%c1_93, %c0_94, %c0_95] : memref<3x4x4xf32, #tpu.memory_space<vmem>>, vector<1x4x4xf32>
    %125 = vector.shape_cast %124 : vector<1x4x4xf32> to vector<4x4xf32>
    %cst_96 = arith.constant dense<0.000000e+00> : vector<4x64xf32>
    %126 = tpu.matmul %125, %123, %cst_96 {dimension_numbers = #tpu.dot_dimension_numbers<[1], [0], [0], [1], [0, 0, 1, 1], [], []>} : vector<4x4xf32>, vector<4x64xf32>, vector<4x64xf32> -> vector<4x64xf32>
    %c1_97 = arith.constant 1 : index
    %c0_98 = arith.constant 0 : index
    %c0_99 = arith.constant 0 : index
    %127 = vector.load %arg7[%c1_97, %c0_98, %c0_99] : memref<3x4x1xf32, #tpu.memory_space<vmem>>, vector<1x4x1xf32>
    %128 = vector.shape_cast %127 : vector<1x4x1xf32> to vector<4x1xf32>
    %129 = vector.broadcast %128 : vector<4x1xf32> to vector<4x64xf32>
    %130 = arith.addf %126, %129 : vector<4x64xf32>
    %131 = arith.addf %130, %98 : vector<4x64xf32>
    %c0_100 = arith.constant 0 : index
    %c128_101 = arith.constant 128 : index
    %132 = vector.load %arg9[%c0_100, %c128_101] : memref<4x192xf32, #tpu.memory_space<vmem>>, vector<4x64xf32>
    tpu.vector_store %arg9[%c0_100, %c128_101], %131 {strides = array<i32>} : memref<4x192xf32, #tpu.memory_space<vmem>>, vector<4x64xf32>,
    %c6_102 = arith.constant 6 : index
    %c0_103 = arith.constant 0 : index
    %c0_104 = arith.constant 0 : index
    %133 = vector.load %arg4[%c6_102, %c0_103, %c0_104] : memref<9x4x4xf32, #tpu.memory_space<vmem>>, vector<1x4x4xf32>
    %134 = vector.shape_cast %133 : vector<1x4x4xf32> to vector<4x4xf32>
    %c0_105 = arith.constant 0 : index
    %c110 = arith.constant 110 : index
    %135 = vector.load %arg9[%c0_105, %c110] : memref<4x192xf32, #tpu.memory_space<vmem>>, vector<4x64xf32>
    %cst_106 = arith.constant dense<0.000000e+00> : vector<4x64xf32>
    %136 = tpu.matmul %134, %135, %cst_106 {dimension_numbers = #tpu.dot_dimension_numbers<[1], [0], [0], [1], [0, 0, 1, 1], [], []>} : vector<4x4xf32>, vector<4x64xf32>, vector<4x64xf32> -> vector<4x64xf32>
    %c7 = arith.constant 7 : index
    %c0_107 = arith.constant 0 : index
    %c0_108 = arith.constant 0 : index
    %137 = vector.load %arg4[%c7, %c0_107, %c0_108] : memref<9x4x4xf32, #tpu.memory_space<vmem>>, vector<1x4x4xf32>
    %138 = vector.shape_cast %137 : vector<1x4x4xf32> to vector<4x4xf32>
    %c0_109 = arith.constant 0 : index
    %c119 = arith.constant 119 : index
    %139 = vector.load %arg9[%c0_109, %c119] : memref<4x192xf32, #tpu.memory_space<vmem>>, vector<4x64xf32>
    %cst_110 = arith.constant dense<0.000000e+00> : vector<4x64xf32>
    %140 = tpu.matmul %138, %139, %cst_110 {dimension_numbers = #tpu.dot_dimension_numbers<[1], [0], [0], [1], [0, 0, 1, 1], [], []>} : vector<4x4xf32>, vector<4x64xf32>, vector<4x64xf32> -> vector<4x64xf32>
    %141 = arith.addf %136, %140 : vector<4x64xf32>
    %c8 = arith.constant 8 : index
    %c0_111 = arith.constant 0 : index
    %c0_112 = arith.constant 0 : index
    %142 = vector.load %arg4[%c8, %c0_111, %c0_112] : memref<9x4x4xf32, #tpu.memory_space<vmem>>, vector<1x4x4xf32>
    %143 = vector.shape_cast %142 : vector<1x4x4xf32> to vector<4x4xf32>
    %c0_113 = arith.constant 0 : index
    %c128_114 = arith.constant 128 : index
    %144 = vector.load %arg9[%c0_113, %c128_114] : memref<4x192xf32, #tpu.memory_space<vmem>>, vector<4x64xf32>
    %cst_115 = arith.constant dense<0.000000e+00> : vector<4x64xf32>
    %145 = tpu.matmul %143, %144, %cst_115 {dimension_numbers = #tpu.dot_dimension_numbers<[1], [0], [0], [1], [0, 0, 1, 1], [], []>} : vector<4x4xf32>, vector<4x64xf32>, vector<4x64xf32> -> vector<4x64xf32>
    %146 = arith.addf %141, %145 : vector<4x64xf32>
    %c2_116 = arith.constant 2 : index
    %c0_117 = arith.constant 0 : index
    %c0_118 = arith.constant 0 : index
    %147 = vector.load %arg5[%c2_116, %c0_117, %c0_118] : memref<3x4x1xf32, #tpu.memory_space<vmem>>, vector<1x4x1xf32>
    %148 = vector.shape_cast %147 : vector<1x4x1xf32> to vector<4x1xf32>
    %149 = vector.broadcast %148 : vector<4x1xf32> to vector<4x64xf32>
    %150 = arith.addf %146, %149 : vector<4x64xf32>
    %cst_119 = arith.constant 0.000000e+00 : f32
    %151 = vector.broadcast %cst_119 : f32 to vector<4x64xf32>
    %152 = arith.cmpf ogt, %150, %151 : vector<4x64xf32>
    %153 = math.exp %150 : vector<4x64xf32>
    %cst_120 = arith.constant 1.000000e+00 : f32
    %154 = vector.broadcast %cst_120 : f32 to vector<4x64xf32>
    %155 = arith.subf %153, %154 : vector<4x64xf32>
    %156 = arith.select %152, %150, %155 : vector<4x64xi1>, vector<4x64xf32>
    %c2_121 = arith.constant 2 : index
    %c0_122 = arith.constant 0 : index
    %c0_123 = arith.constant 0 : index
    %157 = vector.load %arg6[%c2_121, %c0_122, %c0_123] : memref<3x4x4xf32, #tpu.memory_space<vmem>>, vector<1x4x4xf32>
    %158 = vector.shape_cast %157 : vector<1x4x4xf32> to vector<4x4xf32>
    %cst_124 = arith.constant dense<0.000000e+00> : vector<4x64xf32>
    %159 = tpu.matmul %158, %156, %cst_124 {dimension_numbers = #tpu.dot_dimension_numbers<[1], [0], [0], [1], [0, 0, 1, 1], [], []>} : vector<4x4xf32>, vector<4x64xf32>, vector<4x64xf32> -> vector<4x64xf32>
    %c2_125 = arith.constant 2 : index
    %c0_126 = arith.constant 0 : index
    %c0_127 = arith.constant 0 : index
    %160 = vector.load %arg7[%c2_125, %c0_126, %c0_127] : memref<3x4x1xf32, #tpu.memory_space<vmem>>, vector<1x4x1xf32>
    %161 = vector.shape_cast %160 : vector<1x4x1xf32> to vector<4x1xf32>
    %162 = vector.broadcast %161 : vector<4x1xf32> to vector<4x64xf32>
    %163 = arith.addf %159, %162 : vector<4x64xf32>
    %164 = arith.addf %163, %131 : vector<4x64xf32>
    %165 = arith.truncf %164 : vector<4x64xf32> to vector<4x64xbf16>
    %c0_128 = arith.constant 0 : index
    %c0_129 = arith.constant 0 : index
    %c0_130 = arith.constant 0 : index
    %166 = vector.load %arg8[%c0_128, %c0_129, %c0_130] : memref<1x4x64xbf16, #tpu.memory_space<vmem>>, vector<1x4x64xbf16>
    %167 = vector.shape_cast %166 : vector<1x4x64xbf16> to vector<4x64xbf16>
    %168 = vector.shape_cast %165 : vector<4x64xbf16> to vector<1x4x64xbf16>
    tpu.vector_store %arg8[%c0_128, %c0_129, %c0_130], %168 {strides = array<i32>} : memref<1x4x64xbf16, #tpu.memory_space<vmem>>, vector<1x4x64xbf16>,
    return
  }
  func.func @transform_0(%arg0: i32) -> (i32, i32, i32) {
    %c0_i32 = arith.constant 0 : i32
    %c0_i32_0 = arith.constant 0 : i32
    %c0_i32_1 = arith.constant 0 : i32
    return %arg0, %c0_i32, %c0_i32_0 : i32, i32, i32
  }
  func.func @transform_1(%arg0: i32) -> (i32, i32, i32) {
    %c0_i32 = arith.constant 0 : i32
    %c0_i32_0 = arith.constant 0 : i32
    %c0_i32_1 = arith.constant 0 : i32
    %c0_i32_2 = arith.constant 0 : i32
    return %c0_i32, %c0_i32_0, %c0_i32_1 : i32, i32, i32
  }
  func.func @transform_2(%arg0: i32) -> (i32, i32) {
    %c0_i32 = arith.constant 0 : i32
    %c0_i32_0 = arith.constant 0 : i32
    %c0_i32_1 = arith.constant 0 : i32
    return %c0_i32, %c0_i32_0 : i32, i32
  }
  func.func @transform_3(%arg0: i32) -> (i32, i32, i32) {
    %c0_i32 = arith.constant 0 : i32
    %c0_i32_0 = arith.constant 0 : i32
    %c0_i32_1 = arith.constant 0 : i32
    %c0_i32_2 = arith.constant 0 : i32
    return %c0_i32, %c0_i32_0, %c0_i32_1 : i32, i32, i32
  }
  func.func @transform_4(%arg0: i32) -> (i32, i32, i32) {
    %c0_i32 = arith.constant 0 : i32
    %c0_i32_0 = arith.constant 0 : i32
    %c0_i32_1 = arith.constant 0 : i32
    %c0_i32_2 = arith.constant 0 : i32
    return %c0_i32, %c0_i32_0, %c0_i32_1 : i32, i32, i32
  }
  func.func @transform_5(%arg0: i32) -> (i32, i32, i32) {
    %c0_i32 = arith.constant 0 : i32
    %c0_i32_0 = arith.constant 0 : i32
    %c0_i32_1 = arith.constant 0 : i32
    %c0_i32_2 = arith.constant 0 : i32
    return %c0_i32, %c0_i32_0, %c0_i32_1 : i32, i32, i32
  }
  func.func @transform_6(%arg0: i32) -> (i32, i32, i32) {
    %c0_i32 = arith.constant 0 : i32
    %c0_i32_0 = arith.constant 0 : i32
    %c0_i32_1 = arith.constant 0 : i32
    %c0_i32_2 = arith.constant 0 : i32
    return %c0_i32, %c0_i32_0, %c0_i32_1 : i32, i32, i32
  }
  func.func @transform_7(%arg0: i32) -> (i32, i32, i32) {
    %c0_i32 = arith.constant 0 : i32
    %c0_i32_0 = arith.constant 0 : i32
    %c0_i32_1 = arith.constant 0 : i32
    return %arg0, %c0_i32, %c0_i32_0 : i32, i32, i32
  }
}

</mosaic_0001>

<bundles_post_ra>
// kernel: tpu_custom_call.1
= control target key start
LH: loop header
LB: loop body
LE: loop exit
PB: predicated region body
PF: predicated region fallthrough
CT: control target
= control target key end

     0   :  { %12 = vsyncpa [#allocation4], 0  ;;  %s2066_s0 = inlined_call_operand.vmem [shape: f32[2,1,70], index: 0, kind: input, shape index: {}]   ;;  %s2067_s1 = inlined_call_operand.vmem [shape: f32[7,4,1], index: 1, kind: input, shape index: {}]   ;;  %s2068_s2 = inlined_call_operand.vmem [shape: f32[4,1], index: 2, kind: input, shape index: {}]   ;;  %s2069_s3 = inlined_call_operand.vmem [shape: f32[9,4,4], index: 3, kind: input, shape index: {}]   ;;  %s2070_s4 = inlined_call_operand.vmem [shape: f32[3,4,1], index: 4, kind: input, shape index: {}]   ;;  %s2071_s5 = inlined_call_operand.vmem [shape: f32[3,4,4], index: 5, kind: input, shape index: {}]   ;;  %s2072_s6 = inlined_call_operand.vmem [shape: f32[3,4,1], index: 6, kind: input, shape index: {}]   ;;  %s2073_s7 = inlined_call_operand.hbm [shape: bf16[2,4,64], index: 7, kind: output, shape index: {}]  }
   0x1   :  { %14 = vsyncpa [#allocation4 + $0x1], 0  ;;  %s1824_s24 = smov 0   ;;  %s1826_s25 = smov 0  }
   0x2   :  { %s1828_s26 = smov 0   ;;  %s1830_s27 = smov 0  }
   0x3 LB: > { %s1845_s28 = sadd.s32 4294967295, %s1766_s27   ;;  %s1497_s29 = sadd.s32 4294967294, %s1766_s27   ;;  %s1766_s27 = sphi %s1830_s27, %s2079_s27   ;;  %s1762_s26 = sphi %s1828_s26, %s2078_s26   ;;  %s1758_s25 = sphi %s1826_s25, %s2077_s25   ;;  %s1754_s24 = sphi %s1824_s24, %s2076_s24  }
   0x4   : > { %s1849_s30 = sadd.s32 1, %s1766_s27   ;;  %s179_s8 = sadd.s32 1, %s1762_s26 }
   0x5   : > { %s176_s9 = ssub.s32 %s1766_s27, %s1849_s30  ;;  %p189_p0 = scmp.ne.s32.totalorder %s1762_s26, %s1758_s25 }
   0x6   : > { %p177_p1 = scmp.eq.s32.totalorder %s176_s9, 0  ;;  %p190_p2 = scmp.eq.s32.totalorder %s1845_s28, 1 }
   0x7   : > { %p195_p3 = scmp.ne.s32.totalorder %s1758_s25, %s1754_s24  ;;  %p196_p4 = scmp.eq.s32.totalorder %s1497_s29, 1 }
   0x8   : > { %s1860_s10 = scalar_select %p177_p1, %s1762_s26, %s179_s8  }
   0x9   : > { %p1862_p5 = por %p190_p2, %p189_p0  ;;  %p1866_p6 = por %p196_p4, %p195_p3 }
   0xa   : > { %p1500_p7 = scmp.ge.s32.totalorder %s1766_s27, 1  ;;  %p238_p8 = scmp.lt.s32.totalorder %s1766_s27, 3 }
   0xc   : > { %p239_p9 = pnand %p1500_p7, %p238_p8 }
   0xd   : > { %p268_p10 = scmp.lt.s32.totalorder (!%p239_p9), %s1845_s28, 1  ;;  %s1769_s17 = smov (!%p239_p9), 127  }
   0xe   : > { %242 = sbr.rel (%p239_p9) target bundleno = 1962 (0x7aa), region = 48  ;;  %s1770_s18 = smov (!%p239_p9), 126  }
   0xf   : > { %s1771_s19 = smov (!%p239_p9), 125   ;;  %s1773_s22 = smov (!%p239_p9), 124  }
  0x10   : > { %s1774_s23 = smov (!%p239_p9), 123   ;;  %s1775_s29 = smov (!%p239_p9), 122  }
  0x11   : > { %s1777_s8 = smov (!%p239_p9), 1   ;;  %s1778_s9 = smov (!%p239_p9), 2  }
  0x12   : > { %s1783_s21 = smov (!%p239_p9), [#allocation3]  }
  0x13   : > { %v1505_v0 = vld [vmem:[%s2067_s1 + $0xc] sm:$0xf]  ;;  %v1503_v1 = vld [vmem:[%s2067_s1 + $0x4] sm:$0xf]  ;;  %v1768_v2 = vmov 0   ;;  %s269_s13 = scalar_select %p268_p10, %s1845_s28, 1 }
  0x14   : > { %1694 = vset.pattern.permute.xlu1 %v1768_v2  ;;  %1693 = vset.pattern.permute.xlu0 %v1768_v2  ;;  %v1506_v3 = vld [vmem:[%s2067_s1 + $0x10] sm:$0xf]  ;;  %v1504_v4 = vld [vmem:[%s2067_s1 + $0x8] sm:$0xf]  ;;  %v1508_v5 = vld [vmem:[%s2067_s1 + $0x18] sm:$0xf] }
  0x15   : > { %315 = vperm.xlu1 %1694, %v1505_v0   ;;  %289 = vperm.xlu0 %1693, %v1503_v1   ;;  %v1507_v6 = vld [vmem:[%s2067_s1 + $0x14] sm:$0xf]  ;;  %v272_v7 = vld [vmem:[%s2067_s1] sm:$0xf]  ;;  %s270_s16 = scalar_lea.vmem %s2066_s0, %s269_s13  ;;  %vm375_vm0 = vcmask 1043456   ;;  %vm376_vm1 = vcmask 523268  }
  0x16   : > { %v1502_v8 = vld [vmem:[%s270_s16] ss:$0 sm:$0xff]  ;;  %vm377_vm2 = vmor %vm376_vm1, %vm375_vm0  ;;  %v1772_v17 = vmov 0.0   ;;  %vm379_vm3 = vcmask 519168   ;;  %vm1776_vm4 = vmmov 0   ;;  %vm391_vm6 = vcmask 7168  }
  0x17   : > { %v363_v16 = vld [vmem:[%s2068_s2] sm:$0xf]  ;;  %378 = vst.msk [vmem:[#allocation2] sm:$0xff] %vm377_vm2, %v1772_v17  ;;  %1579 = vmatprep.subr.mxu0 %v1772_v17  ;;  %1584 = vmatprep.subr.mxu1 %v1772_v17  ;;  %v1510_v49 = vld [vmem:[%s2069_s3 + $0x4] sm:$0xf]  ;;  %vm393_vm7 = vcmask 31744  }
  0x18   : > { %1581 = vmatprep.mubr.msk.f32.mxu0 %vm1776_vm4, %v1772_v17  ;;  %1586 = vmatprep.mubr.msk.f32.mxu1 %vm1776_vm4, %v1772_v17  ;;  %v630_v45 = vld [vmem:[%s2070_s4] sm:$0xf]  ;;  %vm473_vm8 = vcmask 15360   ;;  %v1515_v55 = vld [vmem:[%s2069_s3 + $0x8] sm:$0xf]  ;;  %vm738_vm10 = vcmask 23552  }
  0x19   : > { %328 = vperm.xlu1 %1694, %v1506_v3   ;;  %302 = vperm.xlu0 %1693, %v1504_v4   ;;  %v643_v46 = vld [vmem:[%s2072_s6] sm:$0xf]  ;;  %vm819_vm11 = vcmask 48128   ;;  %vm1087_vm13 = vcmask 72704   ;;  %vm1168_vm14 = vcmask 146432   ;;  %s1552_s13 = sshll.u32 %s1845_s28, 5 }
  0x1a   : > { %v381_v54 = vld [vmem:[%s2069_s3] sm:$0xf]  ;;  %vm1425_vm1 = vcmask 517120   ;;  %s1710_s28 = sshll.u32 %s1783_s21, 4  ;;  %s1711_s28 = int_to_ptr.vmem [resolvable:$false] %s1710_s28 }
  0x1d   : > { %354 = vperm.xlu1 %1694, %v1508_v5   ;;  %341 = vperm.xlu0 %1693, %v1507_v6   ;;  %v642_v6 = vld [vmem:[%s2071_s5] sm:$0xf] }
  0x21   : > { %275 = vperm.xlu0 %1693, %v272_v7  }
  0x90   : > { %v316_v9 = vpop.permute.xlu1 %315  ;;  %v290_v10 = vpop.permute.xlu0 %289 }
  0x91   : > { %v292_v11 = vmul.f32 %v1502_v8, %v290_v10  ;;  %v318_v12 = vmul.f32 %v1502_v8, %v316_v9 }
  0x93   : > { %294 = vrot.lane.b32.xlu1 %v292_v11, %s1769_s17 }
  0x94   : > { %v329_v13 = vpop.permute.xlu1 %328  ;;  %v303_v14 = vpop.permute.xlu0 %302 }
  0x95   : > { %v305_v15 = vmul.f32 %v1502_v8, %v303_v14  ;;  %v331_v18 = vmul.f32 %v1502_v8, %v329_v13 }
  0x97   : > { %307 = vrot.lane.b32.xlu0 %v305_v15, %s1770_s18  ;;  %320 = vrot.lane.b32.xlu1 %v318_v12, %s1771_s19  ;;  %v1530_v15 = vld [vmem:[%s2070_s4 + $0x4] sm:$0xf]  ;;  %s1439_s18 = scalar_lea.hbm %s2073_s7, %s1552_s13 }
  0x98   : > { %v355_v19 = vpop.permute.xlu1 %354  ;;  %v342_v20 = vpop.permute.xlu0 %341 }
  0x99   : > { %v357_v21 = vmul.f32 %v1502_v8, %v355_v19  ;;  %v344_v22 = vmul.f32 %v1502_v8, %v342_v20  ;;  %v1522_v20 = vld [vmem:[%s2069_s3 + $0x10] sm:$0xf] }
  0x9b   : > { %333 = vrot.lane.b32.xlu0 %v331_v18, %s1773_s22  ;;  %366 = vperm.xlu1 %1694, %v363_v16   ;;  %v1533_v16 = vld [vmem:[%s2072_s6 + $0x4] sm:$0xf]  ;;  %s1712_s22 = scalar_lea.vmem %s1711_s28, 64 }
  0x9c   : > { %v276_v23 = vpop.permute.xlu0 %275 }
  0x9d   : > { %v284_v26 = vmul.f32 %v1502_v8, %v276_v23 }
  0x9f   : > { %346 = vrot.lane.b32.xlu0 %v344_v22, %s1774_s23  ;;  %359 = vrot.lane.b32.xlu1 %v357_v21, %s1775_s29 }
 0x105   : > { %v295_v24 = vpop.permute.xlu1 %294 }
 0x106   : > { %v297_v27 = vadd.f32 %v295_v24, %v284_v26  ;;  %v1527_v26 = vld [vmem:[%s2069_s3 + $0x14] sm:$0xf] }
 0x109   : > { %v308_v25 = vpop.permute.xlu0 %307  ;;  %v321_v30 = vpop.permute.xlu1 %320 }
 0x10a   : > { %v310_v28 = vadd.f32 %v308_v25, %v297_v27  ;;  %v1521_v25 = vld [vmem:[%s2069_s3 + $0xc] sm:$0xf] }
 0x10c   : > { %v323_v31 = vadd.f32 %v321_v30, %v310_v28 }
 0x10d   : > { %v334_v29 = vpop.permute.xlu0 %333 }
 0x10e   : > { %v336_v34 = vadd.f32 %v334_v29, %v323_v31 }
 0x111   : > { %v347_v32 = vpop.permute.xlu0 %346 }
 0x112   : > { %v349_v35 = vadd.f32 %v347_v32, %v336_v34 }
 0x116   : > { %v367_v33 = vpop.permute.xlu1 %366 }
 0x11a   : > { %v360_v36 = vpop.permute.xlu1 %359 }
 0x11b   : > { %v362_v37 = vadd.f32 %v360_v36, %v349_v35 }
 0x11d   : > { %v369_v38 = vadd.f32 %v367_v33, %v362_v37 }
 0x11f   : > { %v371_v39 = vmul.f32 1.442695, %v369_v38  ;;  %vm370_vm5 = vcmp.gt.f32.partialorder %v369_v38, 0.0 }
 0x121   : > { %1698 = vpow2.f32 %v371_v39 }
 0x12e   : > { %v1699_v40 = vpop.eup %1698 }
 0x12f   : > { %v1509_v41 = vadd.f32 -1.0, %v1699_v40 }
 0x131   : > { %v1909_v42 = vsel %vm370_vm5, %v369_v38, %v1509_v41  ;;  %v1532_v41 = vld [vmem:[%s2071_s5 + $0x4] sm:$0xf] }
 0x132   : > { %380 = vst.msk [vmem:[#allocation2 + $0x4] sm:$0xf] %vm379_vm3, %v1909_v42 }
 0x139   : > { %v382_v43 = vld [vmem:[#allocation2] sm:$0xff] }
 0x13a   : > { %387 = vrot.lane.b32.xlu0 %v382_v43, %s1777_s8  ;;  %v386_v44 = vcombine.high %v382_v43, %v382_v43  ;;  %v552_v51 = vld [vmem:[#allocation2 + $0x4] sm:$0xf] }
 0x13c   : > { %389 = vrot.lane.b32.xlu1 %v386_v44, %s1777_s8  ;;  %s1779_s8 = smov 3  }
 0x13e   : > { %469 = vrot.lane.b32.xlu0 %v382_v43, %s1778_s9 }
 0x140   : > { %471 = vrot.lane.b32.xlu1 %v386_v44, %s1778_s9  ;;  %s1780_s9 = smov 6  }
 0x142   : > { %633 = vperm.xlu0 %1693, %v630_v45  }
 0x144   : > { %646 = vperm.xlu1 %1694, %v643_v46  }
 0x1ac   : > { %v388_v47 = vpop.permute.xlu0 %387 }
 0x1ae   : > { %v390_v48 = vpop.permute.xlu1 %389 }
 0x1af   : > { %v392_v50 = vsel %vm391_vm6, %v388_v47, %v390_v48 }
 0x1b0   : > { %1580 = vmatpush3.msk.msra.mxu0 %vm375_vm0, %v392_v50  ;;  %v470_v52 = vpop.permute.xlu0 %469  ;;  %v1545_v50 = vld [vmem:[%s2070_s4 + $0x8] sm:$0xf] }
 0x1b1   : > { %1582 = vmatmul.mubr.msk.f32.vlgmr.msra.gmra.mxu0 %vm393_vm7, %v1510_v49  ;;  %1589 = vmatprep.subr.mxu0 %v1772_v17 }
 0x1b2   : > { %1590 = vmatpush3.msk.msra.mxu0 %vm375_vm0, %v552_v51  ;;  %v472_v53 = vpop.permute.xlu1 %471  ;;  %1591 = vmatprep.mubr.msk.f32.mxu0 %vm1776_vm4, %v1772_v17  ;;  %v1548_v51 = vld [vmem:[%s2072_s6 + $0x8] sm:$0xf] }
 0x1b3   : > { %v474_v56 = vsel %vm473_vm8, %v470_v52, %v472_v53  ;;  %1599 = vmatprep.subr.mxu0 %v1772_v17 }
 0x1b4   : > { %1585 = vmatpush3.msk.msra.mxu1 %vm375_vm0, %v474_v56 }
 0x1b5   : > { %1587 = vmatmul.mubr.msk.f32.vlgmr.msra.gmra.mxu1 %vm393_vm7, %v381_v54  ;;  %1592 = vmatmul.mubr.msk.f32.vlgmr.msra.gmra.mxu0 %vm393_vm7, %v1515_v55  ;;  %v1537_v54 = vld [vmem:[%s2069_s3 + $0x1c] sm:$0xf] }
 0x1b6   : > { %1594 = vmatprep.subr.mxu1 %v1772_v17  ;;  %1596 = vmatprep.mubr.msk.f32.mxu1 %vm1776_vm4, %v1772_v17 }
 0x1b7   : > { %1601 = vmatprep.mubr.msk.f32.mxu0 %vm1776_vm4, %v1772_v17 }
 0x1bd   : > { %v634_v1 = vpop.permute.xlu0 %633 }
 0x1bf   : > { %v647_v8 = vpop.permute.xlu1 %646 }
 0x271   : > { %v465_v57 = vpop.f32.mrf.mxu0 }
 0x273   : > { %v1583_v58 = vpop.f32.mrf.mxu0 }
 0x275   : > { %v546_v59 = vpop.f32.mrf.mxu1  ;;  %v625_v60 = vpop.f32.mrf.mxu0 }
 0x276   : > { %v547_v61 = vadd.f32 %v546_v59, %v465_v57  ;;  %v1536_v59 = vld [vmem:[%s2069_s3 + $0x18] sm:$0xf] }
 0x277   : > { %v1588_v62 = vpop.f32.mrf.mxu1  ;;  %v1593_v63 = vpop.f32.mrf.mxu0 }
 0x278   : > { %v629_v0 = vadd.f32 %v625_v60, %v547_v61  ;;  %v1542_v60 = vld [vmem:[%s2069_s3 + $0x20] sm:$0xf] }
 0x27a   : > { %v636_v2 = vadd.f32 %v634_v1, %v629_v0 }
 0x27c   : > { %v638_v3 = vmul.f32 1.442695, %v636_v2  ;;  %vm637_vm9 = vcmp.gt.f32.partialorder %v636_v2, 0.0 }
 0x27e   : > { %1700 = vpow2.f32 %v638_v3 }
 0x28b   : > { %v1701_v4 = vpop.eup %1700 }
 0x28c   : > { %v1518_v5 = vadd.f32 -1.0, %v1701_v4 }
 0x28e   : > { %v641_v7 = vsel %vm637_vm9, %v636_v2, %v1518_v5 }
 0x28f   : > { %1595 = vmatpush3.msk.msra.mxu1 %vm375_vm0, %v641_v7 }
 0x290   : > { %1597 = vmatmul.mubr.msk.f32.vlgmr.msra.gmra.mxu1 %vm393_vm7, %v642_v6  ;;  %1604 = vmatprep.subr.mxu1 %v1772_v17 }
 0x291   : > { %1606 = vmatprep.mubr.msk.f32.mxu1 %vm1776_vm4, %v1772_v17 }
 0x350   : > { %v721_v9 = vpop.f32.mrf.mxu1 }
 0x351   : > { %v722_v10 = vadd.f32 %v721_v9, %v647_v8 }
 0x352   : > { %v1598_v11 = vpop.f32.mrf.mxu1 }
 0x353   : > { %v1952_v12 = vadd.f32 %v722_v10, %v1909_v42 }
 0x355   : > { %726 = vst.msk [vmem:[#allocation2 + $0x4] sm:$0xf] %vm379_vm3, %v1952_v12 }
 0x35c   : > { %v729_v13 = vld [vmem:[#allocation2] sm:$0xff] }
 0x35d   : > { %734 = vrot.lane.b32.xlu0 %v729_v13, %s1779_s8  ;;  %v733_v14 = vcombine.high %v729_v13, %v729_v13  ;;  %v898_v22 = vld [vmem:[#allocation2 + $0x4] sm:$0xf] }
 0x35f   : > { %736 = vrot.lane.b32.xlu1 %v733_v14, %s1779_s8  ;;  %s1781_s8 = smov 9  }
 0x361   : > { %815 = vrot.lane.b32.xlu0 %v729_v13, %s1780_s9 }
 0x363   : > { %817 = vrot.lane.b32.xlu1 %v733_v14, %s1780_s9  ;;  %s1782_s9 = smov 18  }
 0x365   : > { %980 = vperm.xlu0 %1693, %v1530_v15  }
 0x367   : > { %995 = vperm.xlu1 %1694, %v1533_v16  }
 0x3cf   : > { %v735_v18 = vpop.permute.xlu0 %734 }
 0x3d1   : > { %v737_v19 = vpop.permute.xlu1 %736 }
 0x3d2   : > { %v739_v21 = vsel %vm738_vm10, %v735_v18, %v737_v19 }
 0x3d3   : > { %1600 = vmatpush3.msk.msra.mxu0 %vm375_vm0, %v739_v21  ;;  %v816_v23 = vpop.permute.xlu0 %815 }
 0x3d4   : > { %1602 = vmatmul.mubr.msk.f32.vlgmr.msra.gmra.mxu0 %vm393_vm7, %v1522_v20  ;;  %1609 = vmatprep.subr.mxu0 %v1772_v17 }
 0x3d5   : > { %1610 = vmatpush3.msk.msra.mxu0 %vm375_vm0, %v898_v22  ;;  %v818_v24 = vpop.permute.xlu1 %817  ;;  %1611 = vmatprep.mubr.msk.f32.mxu0 %vm1776_vm4, %v1772_v17 }
 0x3d6   : > { %v820_v27 = vsel %vm819_vm11, %v816_v23, %v818_v24  ;;  %1619 = vmatprep.subr.mxu0 %v1772_v17 }
 0x3d7   : > { %1605 = vmatpush3.msk.msra.mxu1 %vm375_vm0, %v820_v27 }
 0x3d8   : > { %1607 = vmatmul.mubr.msk.f32.vlgmr.msra.gmra.mxu1 %vm393_vm7, %v1521_v25  ;;  %1612 = vmatmul.mubr.msk.f32.vlgmr.msra.gmra.mxu0 %vm393_vm7, %v1527_v26 }
 0x3d9   : > { %1614 = vmatprep.subr.mxu1 %v1772_v17  ;;  %1616 = vmatprep.mubr.msk.f32.mxu1 %vm1776_vm4, %v1772_v17 }
 0x3da   : > { %1621 = vmatprep.mubr.msk.f32.mxu0 %vm1776_vm4, %v1772_v17 }
 0x3e0   : > { %v981_v36 = vpop.permute.xlu0 %980 }
 0x3e2   : > { %v996_v43 = vpop.permute.xlu1 %995 }
 0x494   : > { %v811_v28 = vpop.f32.mrf.mxu0 }
 0x496   : > { %v1603_v29 = vpop.f32.mrf.mxu0 }
 0x498   : > { %v892_v30 = vpop.f32.mrf.mxu1  ;;  %v971_v31 = vpop.f32.mrf.mxu0 }
 0x499   : > { %v893_v32 = vadd.f32 %v892_v30, %v811_v28 }
 0x49a   : > { %v1608_v33 = vpop.f32.mrf.mxu1  ;;  %v1613_v34 = vpop.f32.mrf.mxu0 }
 0x49b   : > { %v975_v35 = vadd.f32 %v971_v31, %v893_v32 }
 0x49d   : > { %v983_v37 = vadd.f32 %v981_v36, %v975_v35 }
 0x49f   : > { %v985_v38 = vmul.f32 1.442695, %v983_v37  ;;  %vm984_vm12 = vcmp.gt.f32.partialorder %v983_v37, 0.0 }
 0x4a1   : > { %1702 = vpow2.f32 %v985_v38 }
 0x4ae   : > { %v1703_v39 = vpop.eup %1702 }
 0x4af   : > { %v1531_v40 = vadd.f32 -1.0, %v1703_v39 }
 0x4b1   : > { %v988_v42 = vsel %vm984_vm12, %v983_v37, %v1531_v40 }
 0x4b2   : > { %1615 = vmatpush3.msk.msra.mxu1 %vm375_vm0, %v988_v42 }
 0x4b3   : > { %1617 = vmatmul.mubr.msk.f32.vlgmr.msra.gmra.mxu1 %vm393_vm7, %v1532_v41  ;;  %1624 = vmatprep.subr.mxu1 %v1772_v17 }
 0x4b4   : > { %1626 = vmatprep.mubr.msk.f32.mxu1 %vm1776_vm4, %v1772_v17 }
 0x573   : > { %v1070_v44 = vpop.f32.mrf.mxu1 }
 0x574   : > { %v1071_v45 = vadd.f32 %v1070_v44, %v996_v43 }
 0x575   : > { %v1618_v46 = vpop.f32.mrf.mxu1 }
 0x576   : > { %v1995_v47 = vadd.f32 %v1071_v45, %v1952_v12 }
 0x578   : > { %1075 = vst.msk [vmem:[#allocation2 + $0x4] sm:$0xf] %vm379_vm3, %v1995_v47 }
 0x57f   : > { %v1078_v48 = vld [vmem:[#allocation2] sm:$0xff] }
 0x580   : > { %1083 = vrot.lane.b32.xlu0 %v1078_v48, %s1781_s8  ;;  %v1082_v49 = vcombine.high %v1078_v48, %v1078_v48  ;;  %v1247_v56 = vld [vmem:[#allocation2 + $0x4] sm:$0xf] }
 0x582   : > { %1085 = vrot.lane.b32.xlu1 %v1082_v49, %s1781_s8  ;;  %s265_s8 = sand.u32 1, %s1758_s25  }
 0x583   : > { %s1428_s19 = scalar_lea.sflag [#allocation4], %s265_s8 }
 0x584   : > { %1164 = vrot.lane.b32.xlu0 %v1078_v48, %s1782_s9 }
 0x586   : > { %1166 = vrot.lane.b32.xlu1 %v1082_v49, %s1782_s9  ;;  %s1501_s9 = sshll.u32 %s265_s8, 1 }
 0x587   : > { %s267_s14 = scalar_lea.vmem [#allocation3], %s1501_s9 }
 0x588   : > { %1329 = vperm.xlu0 %1693, %v1545_v50   ;;  %s1441_s15 = sshll.u32 %s267_s14, 4  ;;  %s1442_s15 = int_to_ptr.vmem [resolvable:$true] %s1441_s15 }
 0x589   : > { %s1706_s20 = scalar_lea.vmem %s1442_s15, 32  ;;  %p1713_p0 = scmp.lt.s32.totalorder %s1442_s15, %s1711_s28 }
 0x58a   : > { %1344 = vperm.xlu1 %1694, %v1548_v51   ;;  %p1707_p11 = scmp.ne.s32.totalorder %s1442_s15, %s1706_s20  ;;  %p1714_p1 = scmp.lt.s32.totalorder %s1712_s22, %s1706_s20 }
 0x58c   : > { %p1708_p12 = pnand %p1707_p11, %p1862_p5  ;;  %p1715_p2 = por %p1714_p1, %p1713_p0 }
 0x58e   : > { %p1709_p13 = pneg %p1708_p12 }
 0x590   : > { %p1716_p3 = pnand %p1715_p2, %p1709_p13 }
 0x5f2   : > { %v1084_v52 = vpop.permute.xlu0 %1083 }
 0x5f4   : > { %v1086_v53 = vpop.permute.xlu1 %1085 }
 0x5f5   : > { %v1088_v55 = vsel %vm1087_vm13, %v1084_v52, %v1086_v53 }
 0x5f6   : > { %1620 = vmatpush3.msk.msra.mxu0 %vm375_vm0, %v1088_v55  ;;  %v1165_v57 = vpop.permute.xlu0 %1164 }
 0x5f7   : > { %1622 = vmatmul.mubr.msk.f32.vlgmr.msra.gmra.mxu0 %vm393_vm7, %v1537_v54  ;;  %1629 = vmatprep.subr.mxu0 %v1772_v17 }
 0x5f8   : > { %1630 = vmatpush3.msk.msra.mxu0 %vm375_vm0, %v1247_v56  ;;  %v1167_v58 = vpop.permute.xlu1 %1166  ;;  %1631 = vmatprep.mubr.msk.f32.mxu0 %vm1776_vm4, %v1772_v17 }
 0x5f9   : > { %v1169_v61 = vsel %vm1168_vm14, %v1165_v57, %v1167_v58 }
 0x5fa   : > { %1625 = vmatpush3.msk.msra.mxu1 %vm375_vm0, %v1169_v61 }
 0x5fb   : > { %1627 = vmatmul.mubr.msk.f32.vlgmr.msra.gmra.mxu1 %vm393_vm7, %v1536_v59  ;;  %1632 = vmatmul.mubr.msk.f32.vlgmr.msra.gmra.mxu0 %vm393_vm7, %v1542_v60 }
 0x5fc   : > { %1634 = vmatprep.subr.mxu1 %v1772_v17  ;;  %1636 = vmatprep.mubr.msk.f32.mxu1 %vm1776_vm4, %v1772_v17  ;;  %v1547_v17 = vld [vmem:[%s2071_s5 + $0x8] sm:$0xf] }
 0x603   : > { %v1330_v6 = vpop.permute.xlu0 %1329 }
 0x605   : > { %v1345_v12 = vpop.permute.xlu1 %1344 }
 0x6b7   : > { %v1160_v62 = vpop.f32.mrf.mxu0 }
 0x6b9   : > { %v1623_v63 = vpop.f32.mrf.mxu0 }
 0x6bb   : > { %v1241_v0 = vpop.f32.mrf.mxu1  ;;  %v1320_v1 = vpop.f32.mrf.mxu0 }
 0x6bc   : > { %v1242_v2 = vadd.f32 %v1241_v0, %v1160_v62 }
 0x6bd   : > { %v1628_v3 = vpop.f32.mrf.mxu1  ;;  %v1633_v4 = vpop.f32.mrf.mxu0 }
 0x6be   : > { %v1324_v5 = vadd.f32 %v1320_v1, %v1242_v2 }
 0x6c0   : > { %v1332_v7 = vadd.f32 %v1330_v6, %v1324_v5 }
 0x6c2   : > { %v1334_v8 = vmul.f32 1.442695, %v1332_v7  ;;  %vm1333_vm15 = vcmp.gt.f32.partialorder %v1332_v7, 0.0 }
 0x6c4   : > { %1704 = vpow2.f32 %v1334_v8 }
 0x6d1   : > { %v1705_v9 = vpop.eup %1704 }
 0x6d2   : > { %v1546_v10 = vadd.f32 -1.0, %v1705_v9 }
 0x6d4   : > { %v1337_v11 = vsel %vm1333_vm15, %v1332_v7, %v1546_v10 }
 0x6d5   : > { %1635 = vmatpush3.msk.msra.mxu1 %vm375_vm0, %v1337_v11 }
 0x6d6   : > { %1637 = vmatmul.mubr.msk.f32.vlgmr.msra.gmra.mxu1 %vm393_vm7, %v1547_v17 }
 0x796   : > { %v1419_v13 = vpop.f32.mrf.mxu1 }
 0x797   : > { %v1420_v14 = vadd.f32 %v1419_v13, %v1345_v12 }
 0x798   : > { %v1638_v15 = vpop.f32.mrf.mxu1 }
 0x799   : > { %v1423_v16 = vadd.f32 %v1420_v14, %v1995_v47 }
 0x79b   : > { %v1424_v18 = vpack.c.bf16 %v1423_v16, %v1423_v16 }
 0x79d   : > { %1426 = vst.msk [vmem:[%s267_s14] sm:$0x3] %vm1425_vm1, %v1424_v18 }
 0x79e   : > { %1719 = shalt.err (!%p1716_p3)
}
 0x79f   : > { %s1720_s23 = scalar_lea.hbm %s1439_s18, 32  ;;  %s1724_s9 = scalar_lea.hbm %s2073_s7, 64 }
 0x7a0   : > { %p1721_p4 = scmp.ne.s32.totalorder %s1439_s18, %s1720_s23  ;;  %p1725_p9 = scmp.lt.s32.totalorder %s1439_s18, %s2073_s7 }
 0x7a1   : > { %p1726_p10 = scmp.lt.s32.totalorder %s1724_s9, %s1720_s23 }
 0x7a2   : > { %p1722_p7 = pnand %p1721_p4, %p1862_p5 }
 0x7a3   : > { %p1727_p11 = por %p1726_p10, %p1725_p9 }
 0x7a4   : > { %p1723_p8 = pneg %p1722_p7 }
 0x7a6   : > { %p1728_p12 = pnand %p1727_p11, %p1723_p8 }
 0x7a8   : > { %1731 = shalt.err (!%p1728_p12)
}
 0x7a9   : > { %1639 = dma.vmem_to_hbm [thread:$0]  (%p1862_p5), %s1442_s15, 32, %s1439_s18, %s1428_s19  }
 0x7aa PF: > { %p1645_p13 = scmp.ge.s32.totalorder %s1766_s27, 2  ;;  %s1453_s16 = sand.u32 1, %s1754_s24  }
 0x7ab   : > { %s1454_s17 = scalar_lea.sflag [#allocation4], %s1453_s16 }
 0x7ac   : > { %p1642_p0 = pnand %p1645_p13, %p1866_p6 }
 0x7ae   : > { %p1643_p1 = pneg %p1642_p0 }
 0x7b0   : > { %1749 = dma.done.wait (%p1643_p1), %s1454_s17, 32  }
 0x7b1   : > { %1751 = vsyncadd (%p1643_p1), %s1454_s17, 4294967264  ;;  %p17_p2 = scmp.ge.s32.totalorder %s1849_s30, 4   ;;  %s2076_s24 = smov %s1758_s25 }
 0x7b2   : > { %s2077_s25 = smov %s1762_s26  ;;  %s2078_s26 = smov %s1860_s10 }
 0x7b3   : > { %s2079_s27 = smov %s1849_s30  ;;  %19 = sbr.rel (!%p17_p2) target bundleno = 3 (0x3), region = 103 }
 0x7b8   :  { %1459 = vsyncpa [#allocation4], 1 }
 0x7b9   :  { %1461 = vsyncpa [#allocation4 + $0x1], 1 }

</bundles_post_ra>
